<compile_context>
chip_gen: v7x
topology: tpu7x:2x2x1
jax: 0.10.0
libtpu: 0.0.40
codegen_flags: <defaults>
</compile_context>

<pallas_src>
import functools

import jax
import jax.numpy as jnp
from jax.experimental import pallas as pl
from jax.experimental.pallas import tpu as pltpu

LANES = 128  # lane-dense width used for the hidden / head / output slabs


def vampnet_kernel(pg_ref, w_ref, out_ref, *, K, n_dims, lanes):
    half = lanes // 2

    # --- pseudo_generator: Linear(K -> n_dims) + Hardtanh(0, 1) ---
    # eye(K) @ W is exactly W, so the identity matmul is elided (bit-exact).
    w_pg = pg_ref[pl.ds(0, K), :]
    b_pg = pg_ref[pl.ds(K, 1), :]
    pseudo = jnp.clip(w_pg + b_pg, 0.0, 1.0)

    # --- static views into the packed weight slab (8-aligned sublane offsets) ---
    w1 = w_ref[pl.ds(0, n_dims), :]                      # (n_dims, lanes)
    w_head = w_ref[pl.ds(n_dims, lanes), :]              # (lanes, lanes)
    b1 = w_ref[pl.ds(n_dims + lanes, 1), :]              # (1, lanes)
    b_head = w_ref[pl.ds(n_dims + lanes + 1, 1), :]      # (1, lanes)

    # --- encoder hidden layer: Linear(n_dims -> hidden) + ReLU (zero-padded to `lanes`) ---
    h = jnp.maximum(
        jnp.dot(pseudo, w1, preferred_element_type=jnp.float32) + b1, 0.0)

    # --- fused encoder heads: mu in cols [0, half), logvar in cols [half, lanes) ---
    head = jnp.dot(h, w_head, preferred_element_type=jnp.float32) + b_head

    col = jax.lax.broadcasted_iota(jnp.int32, head.shape, dimension=1)
    # std = exp(0.5 * logvar) on the logvar half; mu half passes through.
    # Keep this as a select (do NOT turn into arithmetic masking): exp over dead/mu lanes
    # is harmless under jnp.where but would corrupt results if multiplied in.
    out_ref[...] = jnp.where(col >= half, jnp.exp(0.5 * head), head)


def pack_vampnet_params(params, K, n_dims, hidden, latent, lanes=LANES):
    """One-time parameter prep (NOT in the per-forward hot path)."""
    assert hidden <= lanes and 2 * latent <= lanes
    half = lanes // 2
    assert latent <= half

    # pseudo_generator slab: rows [0,K) = W_pg (stored (in,out) = torch W^T), row K = b_pg
    pg_slab = jnp.concatenate([params["w_pg"], params["b_pg"]], axis=0)  # (K+1, n_dims)

    # weight slab: W1 rows, then W_head rows, then bias rows, padded to a multiple of 8.
    n_rows = n_dims + lanes + 8
    w_slab = jnp.zeros((n_rows, lanes), jnp.float32)
    w_slab = w_slab.at[:n_dims, :hidden].set(params["w1"])
    w_slab = w_slab.at[n_dims:n_dims + hidden, :latent].set(params["wmu"])
    w_slab = w_slab.at[n_dims:n_dims + hidden, half:half + latent].set(params["wlv"])
    w_slab = w_slab.at[n_dims + lanes, :hidden].set(params["b1"][0])
    w_slab = w_slab.at[n_dims + lanes + 1, :latent].set(params["bmu"][0])
    w_slab = w_slab.at[n_dims + lanes + 1, half:half + latent].set(params["blv"][0])
    return pg_slab, w_slab


@functools.partial(jax.jit, static_argnames=("K", "n_dims", "latent"))
def vampnet_forward(pg_slab, w_slab, K, n_dims, latent):
    lanes = w_slab.shape[1]
    half = lanes // 2

    vmem = pl.BlockSpec(memory_space=pltpu.MemorySpace.VMEM)
    in_bytes = (int(pg_slab.size) + int(w_slab.size)) * 4
    cost = pl.CostEstimate(
        flops=2 * K * n_dims * lanes + 2 * K * lanes * lanes,
        transcendentals=K * lanes,
        bytes_accessed=in_bytes + K * lanes * 4,
    )

    out = pl.pallas_call(
        functools.partial(vampnet_kernel, K=K, n_dims=n_dims, lanes=lanes),
        out_shape=jax.ShapeDtypeStruct((K, lanes), jnp.float32),
        in_specs=[vmem, vmem],
        out_specs=vmem,
        cost_estimate=cost,
    )(pg_slab, w_slab)

    vamp_mu = out[:, :latent]
    vamp_std = out[:, half:half + latent]
    return vamp_mu, vamp_std


def init_params(key, K, n_dims, hidden, latent):
    ks = jax.random.split(key, 8)

    def lin(kw, fan_in, fan_out):
        scale = 1.0 / jnp.sqrt(jnp.float32(fan_in))
        return jax.random.uniform(kw, (fan_in, fan_out), jnp.float32, -scale, scale)

    return {
        # pseudo_generator: Linear(K, n_dims)   (stored as (in, out); = W^T of torch)
        "w_pg": lin(ks[0], K, n_dims),
        "b_pg": jax.random.uniform(ks[1], (1, n_dims), jnp.float32, -0.5, 0.5),
        # encoder hidden layer: Linear(n_dims, hidden)
        "w1": lin(ks[2], n_dims, hidden),
        "b1": jax.random.uniform(ks[3], (1, hidden), jnp.float32, -0.1, 0.1),
        # encoder heads
        "wmu": lin(ks[4], hidden, latent),
        "bmu": jax.random.uniform(ks[5], (1, latent), jnp.float32, -0.1, 0.1),
        "wlv": lin(ks[6], hidden, latent),
        "blv": jax.random.uniform(ks[7], (1, latent), jnp.float32, -0.1, 0.1),
    }


if __name__ == "__main__":
    # Small shapes consistent with the module: K pseudo-inputs, n_dims = C*H*W
    K = 2
    C, H, W = 4, 8, 8
    n_dims = C * H * W        # 256
    hidden = 128
    latent = 32

    key = jax.random.PRNGKey(0)
    params = init_params(key, K, n_dims, hidden, latent)

    # One-time packing, outside the per-forward hot path.
    pg_slab, w_slab = pack_vampnet_params(params, K, n_dims, hidden, latent)
    pg_slab, w_slab = jax.block_until_ready((pg_slab, w_slab))

    vamp_mu, vamp_std = vampnet_forward(pg_slab, w_slab, K, n_dims, latent)
    jax.block_until_ready((vamp_mu, vamp_std))

    # Reference check in plain JAX (same math) to validate kernel semantics.
    eye = jnp.eye(K, dtype=jnp.float32)
    pseudo = jnp.clip(eye @ params["w_pg"] + params["b_pg"], 0.0, 1.0)
    h = jnp.maximum(pseudo @ params["w1"] + params["b1"], 0.0)
    ref_mu = h @ params["wmu"] + params["bmu"]
    ref_std = jnp.exp(0.5 * (h @ params["wlv"] + params["blv"]))
    assert vamp_mu.shape == (K, latent) and vamp_std.shape == (K, latent)
    assert jnp.allclose(vamp_mu, ref_mu, atol=1e-5), "mu mismatch"
    assert jnp.allclose(vamp_std, ref_std, atol=1e-5), "std mismatch"

    print("KERNEL_OK")
</pallas_src>

<mosaic_0001>
module attributes {stable_mosaic.version = 11 : i64} {
  func.func @vampnet_kernel(%arg0: memref<3x256xf32, #tpu.memory_space<vmem>>, %arg1: memref<392x128xf32, #tpu.memory_space<vmem>>, %arg2: memref<2x128xf32, #tpu.memory_space<vmem>>) attributes {dimension_semantics = [], scalar_prefetch = 0 : i64, scratch_operands = 0 : i64, tpu.core_type = #tpu.core_type<tc>} {
    %c0 = arith.constant 0 : index
    %c0_0 = arith.constant 0 : index
    %0 = vector.load %arg0[%c0, %c0_0] : memref<3x256xf32, #tpu.memory_space<vmem>>, vector<2x256xf32>
    %c2 = arith.constant 2 : index
    %c0_1 = arith.constant 0 : index
    %1 = vector.load %arg0[%c2, %c0_1] : memref<3x256xf32, #tpu.memory_space<vmem>>, vector<1x256xf32>
    %2 = vector.broadcast %1 : vector<1x256xf32> to vector<2x256xf32>
    %3 = arith.addf %0, %2 : vector<2x256xf32>
    %cst = arith.constant 0.000000e+00 : f32
    %cst_2 = arith.constant 1.000000e+00 : f32
    %4 = vector.broadcast %cst : f32 to vector<2x256xf32>
    %5 = arith.maximumf %4, %3 : vector<2x256xf32>
    %6 = vector.broadcast %cst_2 : f32 to vector<2x256xf32>
    %7 = arith.minimumf %6, %5 : vector<2x256xf32>
    %c0_3 = arith.constant 0 : index
    %c0_4 = arith.constant 0 : index
    %8 = vector.load %arg1[%c0_3, %c0_4] : memref<392x128xf32, #tpu.memory_space<vmem>>, vector<256x128xf32>
    %c256 = arith.constant 256 : index
    %c0_5 = arith.constant 0 : index
    %9 = vector.load %arg1[%c256, %c0_5] : memref<392x128xf32, #tpu.memory_space<vmem>>, vector<128x128xf32>
    %c384 = arith.constant 384 : index
    %c0_6 = arith.constant 0 : index
    %10 = vector.load %arg1[%c384, %c0_6] : memref<392x128xf32, #tpu.memory_space<vmem>>, vector<1x128xf32>
    %c385 = arith.constant 385 : index
    %c0_7 = arith.constant 0 : index
    %11 = vector.load %arg1[%c385, %c0_7] : memref<392x128xf32, #tpu.memory_space<vmem>>, vector<1x128xf32>
    %cst_8 = arith.constant dense<0.000000e+00> : vector<2x128xf32>
    %12 = tpu.matmul %7, %8, %cst_8 {dimension_numbers = #tpu.dot_dimension_numbers<[1], [0], [0], [1], [0, 0, 1, 1], [], []>} : vector<2x256xf32>, vector<256x128xf32>, vector<2x128xf32> -> vector<2x128xf32>
    %13 = vector.broadcast %10 : vector<1x128xf32> to vector<2x128xf32>
    %14 = arith.addf %12, %13 : vector<2x128xf32>
    %cst_9 = arith.constant 0.000000e+00 : f32
    %15 = vector.broadcast %cst_9 : f32 to vector<2x128xf32>
    %16 = arith.maximumf %14, %15 : vector<2x128xf32>
    %cst_10 = arith.constant dense<0.000000e+00> : vector<2x128xf32>
    %17 = tpu.matmul %16, %9, %cst_10 {dimension_numbers = #tpu.dot_dimension_numbers<[1], [0], [0], [1], [0, 0, 1, 1], [], []>} : vector<2x128xf32>, vector<128x128xf32>, vector<2x128xf32> -> vector<2x128xf32>
    %18 = vector.broadcast %11 : vector<1x128xf32> to vector<2x128xf32>
    %19 = arith.addf %17, %18 : vector<2x128xf32>
    %20 = tpu.iota {dimensions = array<i32: 1>} : vector<2x128xi32>
    %c64_i32 = arith.constant 64 : i32
    %21 = vector.broadcast %c64_i32 : i32 to vector<2x128xi32>
    %22 = arith.cmpi sge, %20, %21 : vector<2x128xi32>
    %cst_11 = arith.constant 5.000000e-01 : f32
    %23 = vector.broadcast %cst_11 : f32 to vector<2x128xf32>
    %24 = arith.mulf %23, %19 : vector<2x128xf32>
    %25 = math.exp %24 : vector<2x128xf32>
    %26 = arith.select %22, %25, %19 : vector<2x128xi1>, vector<2x128xf32>
    %c0_12 = arith.constant 0 : index
    %c0_13 = arith.constant 0 : index
    %27 = vector.load %arg2[%c0_12, %c0_13] : memref<2x128xf32, #tpu.memory_space<vmem>>, vector<2x128xf32>
    tpu.vector_store %arg2[%c0_12, %c0_13], %26 {strides = array<i32>} : memref<2x128xf32, #tpu.memory_space<vmem>>, vector<2x128xf32>,
    return
  }
}

</mosaic_0001>

<bundles_post_ra>
// kernel: vampnet_forward.1
= control target key start
LH: loop header
LB: loop body
LE: loop exit
PB: predicated region body
PF: predicated region fallthrough
CT: control target
= control target key end

     0   :  { %7 = vsyncpa [#allocation3], 0  ;;  %s538_s0 = inlined_call_operand.hbm [shape: f32[3,256], index: 0, kind: input, shape index: {}]   ;;  %s539_s1 = inlined_call_operand.hbm [shape: f32[392,128], index: 1, kind: input, shape index: {}]   ;;  %s540_s2 = inlined_call_operand.vmem [shape: f32[2,128], index: 2, kind: output, shape index: {}]  }
   0x1   :  { %8 = vsyncpa [#allocation5], 0  ;;  %s472_s9 = smov [#allocation2]   ;;  %s473_s11 = smov [#allocation4]  }
   0x2   :  { %s15_s10 = sshll.u32 %s472_s9, 4  ;;  %s24_s12 = sshll.u32 %s473_s11, 4  ;;  %s16_s10 = int_to_ptr.vmem [resolvable:$true] %s15_s10  ;;  %s494_s12 = int_to_ptr.vmem [resolvable:$true] %s24_s12 }
   0x3   :  { %s424_s15 = scalar_lea.hbm %s538_s0, 128 }
   0x4   :  { %p425_p0 = scmp.ne.s32.totalorder %s538_s0, %s424_s15  ;;  %p428_p1 = scmp.lt.u32.totalorder %s424_s15, %s538_s0 }
   0x6   :  { %p430_p2 = pnand %p428_p1, %p425_p0 }
   0x8   :  { %433 = shalt.err (!%p430_p2)
}
   0x9   :  { %s434_s20 = scalar_lea.vmem %s16_s10, 128  ;;  %p439_p4 = scmp.lt.s32.totalorder %s16_s10, %s16_s10 }
   0xa   :  { %p435_p3 = scmp.ne.s32.totalorder %s16_s10, %s434_s20  ;;  %p440_p5 = scmp.lt.s32.totalorder %s434_s20, %s434_s20 }
   0xc   :  { %p441_p6 = por %p440_p5, %p439_p4 }
   0xe   :  { %p442_p7 = pnand %p441_p6, %p435_p3 }
  0x10   :  { %445 = shalt.err (!%p442_p7)
}
  0x11   :  { %18 = dma.hbm_to_vmem [thread:$0]  %s538_s0, 128, %s16_s10, [#allocation3]  }
  0x12   :  { %s446_s25 = scalar_lea.hbm %s539_s1, 6272 }
  0x13   :  { %p447_p8 = scmp.ne.s32.totalorder %s539_s1, %s446_s25  ;;  %p450_p9 = scmp.lt.u32.totalorder %s446_s25, %s539_s1 }
  0x15   :  { %p452_p10 = pnand %p450_p9, %p447_p8 }
  0x17   :  { %455 = shalt.err (!%p452_p10)
}
  0x18   :  { %s456_s30 = scalar_lea.vmem %s494_s12, 6272  ;;  %p461_p12 = scmp.lt.s32.totalorder %s494_s12, %s494_s12 }
  0x19   :  { %p457_p11 = scmp.ne.s32.totalorder %s494_s12, %s456_s30  ;;  %p462_p13 = scmp.lt.s32.totalorder %s456_s30, %s456_s30 }
  0x1b   :  { %p463_p0 = por %p462_p13, %p461_p12 }
  0x1d   :  { %p464_p1 = pnand %p463_p0, %p457_p11 }
  0x1f   :  { %467 = shalt.err (!%p464_p1)
}
  0x20   :  { %s474_s0 = smov 128   ;;  %s475_s3 = smov 8  }
  0x21   :  { %30 = dma.hbm_to_vmem [thread:$0]  %s539_s1, 6272, %s494_s12, [#allocation5], %s474_s0, %s474_s0, %s475_s3  }
  0x22   :  { %468 = dma.done.wait [#allocation3], 128  }
  0x23   :  { %469 = vsyncadd [#allocation3], 4294967168 }
  0x24   :  { %470 = dma.done.wait [#allocation5], 6272  }
  0x25   :  { %471 = vsyncadd [#allocation5], 4294961024  ;;  %v476_v0 = vmov 0.0|0.0   ;;  %v70_v1 = vld [vmem:[#allocation4 + $0x80] sm:$0xff]  ;;  %v71_v2 = vld [vmem:[#allocation4 + $0x88] sm:$0xff]  ;;  %v41_v4 = vlaneseq  ;;  %vm477_vm0 = vmmov 0  }
  0x26   :  { %391 = vmatprep.subr.bf16.mxu1 %v476_v0  ;;  %v54_v3 = vld [vmem:[#allocation4] sm:$0xff]  ;;  %v359_v5 = vpack.c.bf16 %v71_v2, %v70_v1  ;;  %v55_v6 = vld [vmem:[#allocation4 + $0x8] sm:$0xff]  ;;  %v72_v7 = vld [vmem:[#allocation4 + $0x90] sm:$0xff] }
  0x27   :  { %v73_v8 = vld [vmem:[#allocation4 + $0x98] sm:$0xff]  ;;  %v361_v9 = vpack.c.bf16 %v55_v6, %v54_v3  ;;  %v56_v11 = vld [vmem:[#allocation4 + $0x10] sm:$0xff]  ;;  %v74_v13 = vld [vmem:[#allocation4 + $0xa0] sm:$0xff]  ;;  %v42_v16 = vshrl.u32 %v41_v4, 7 }
  0x28   :  { %v363_v10 = vpack.c.bf16 %v73_v8, %v72_v7  ;;  %v57_v12 = vld [vmem:[#allocation4 + $0x18] sm:$0xff]  ;;  %360 = vmatprep.subr.bf16.mxu0 %v359_v5  ;;  %v75_v14 = vld [vmem:[#allocation4 + $0xa8] sm:$0xff]  ;;  %v58_v18 = vld [vmem:[#allocation4 + $0x20] sm:$0xff] }
  0x29   :  { %362 = vmatpush3.bf16.msra.mxu0 %v361_v9  ;;  %v365_v15 = vpack.c.bf16 %v57_v12, %v56_v11  ;;  %v367_v17 = vpack.c.bf16 %v75_v14, %v74_v13  ;;  %v59_v19 = vld [vmem:[#allocation4 + $0x28] sm:$0xff]  ;;  %v76_v20 = vld [vmem:[#allocation4 + $0xb0] sm:$0xff]  ;;  %v77_v21 = vld [vmem:[#allocation4 + $0xb8] sm:$0xff]  ;;  %v43_v23 = vsub.s32 0, %v42_v16  ;;  %v47_v24 = vsub.s32 1, %v42_v16 }
  0x2a   :  { %364 = vmatprep.subr.bf16.mxu0 %v363_v10  ;;  %v369_v22 = vpack.c.bf16 %v59_v19, %v58_v18  ;;  %v371_v25 = vpack.c.bf16 %v77_v21, %v76_v20  ;;  %v60_v26 = vld [vmem:[#allocation4 + $0x30] sm:$0xff]  ;;  %v61_v27 = vld [vmem:[#allocation4 + $0x38] sm:$0xff]  ;;  %v78_v28 = vld [vmem:[#allocation4 + $0xc0] sm:$0xff] }
  0x2b   :  { %v79_v29 = vld [vmem:[#allocation4 + $0xc8] sm:$0xff]  ;;  %v39_v30 = vld [vmem:[#allocation2 + $0x2] ss:$4 sm:$0x3]  ;;  %v86_v31 = vld [vmem:[#allocation4 + $0x100] sm:$0xff]  ;;  %v373_v33 = vpack.c.bf16 %v61_v27, %v60_v26 }
  0x2c   :  { %v87_v32 = vld [vmem:[#allocation4 + $0x108] sm:$0xff]  ;;  %v44_v34 = vrot.slane %v39_v30, %v43_v23  ;;  %v48_v35 = vrot.slane %v39_v30, %v47_v24  ;;  %v88_v37 = vld [vmem:[#allocation4 + $0x110] sm:$0xff]  ;;  %v89_v38 = vld [vmem:[#allocation4 + $0x118] sm:$0xff]  ;;  %v375_v39 = vpack.c.bf16 %v79_v29, %v78_v28  ;;  %v478_v24 = vmov 0.0  }
  0x2d   :  { %366 = vmatpush3.bf16.msra.mxu0 %v365_v15  ;;  %v392_v36 = vpack.c.bf16 %v87_v32, %v86_v31  ;;  %v62_v40 = vld [vmem:[#allocation4 + $0x40] sm:$0xff]  ;;  %v63_v41 = vld [vmem:[#allocation4 + $0x48] sm:$0xff]  ;;  %v37_v42 = vld [vmem:[#allocation2] sm:$0x33]  ;;  %v395_v46 = vpack.c.bf16 %v89_v38, %v88_v37  ;;  %356 = vmatprep.mubr.msk.f32.mxu1 %vm477_vm0, %v478_v24 }
  0x2e   :  { %368 = vmatprep.subr.bf16.mxu0 %v367_v17  ;;  %v80_v43 = vld [vmem:[#allocation4 + $0xd0] sm:$0xff]  ;;  %v81_v44 = vld [vmem:[#allocation4 + $0xd8] sm:$0xff]  ;;  %v49_v45 = vcombine.low %v44_v34, %v48_v35  ;;  %v90_v47 = vld [vmem:[#allocation4 + $0x120] sm:$0xff]  ;;  %v377_v49 = vpack.c.bf16 %v63_v41, %v62_v40 }
  0x2f   :  { %393 = vmatpush3.bf16.msra.mxu1 %v392_v36  ;;  %v91_v48 = vld [vmem:[#allocation4 + $0x128] sm:$0xff]  ;;  %v379_v51 = vpack.c.bf16 %v81_v44, %v80_v43  ;;  %v64_v52 = vld [vmem:[#allocation4 + $0x50] sm:$0xff]  ;;  %v65_v53 = vld [vmem:[#allocation4 + $0x58] sm:$0xff]  ;;  %v257_v36 = vand.u32 127, %v41_v4 }
  0x30   :  { %394 = vmatprep.subr.bf16.mxu1 %v476_v0  ;;  %v51_v50 = vadd.f32 %v49_v45, %v37_v42  ;;  %v82_v54 = vld [vmem:[#allocation4 + $0xe0] sm:$0xff]  ;;  %v83_v55 = vld [vmem:[#allocation4 + $0xe8] sm:$0xff]  ;;  %v398_v57 = vpack.c.bf16 %v91_v48, %v90_v47  ;;  %v92_v58 = vld [vmem:[#allocation4 + $0x130] sm:$0xff]  ;;  %v381_v60 = vpack.c.bf16 %v65_v53, %v64_v52 }
  0x31   :  { %370 = vmatpush3.bf16.msra.mxu0 %v369_v22  ;;  %v93_v59 = vld [vmem:[#allocation4 + $0x138] sm:$0xff]  ;;  %v383_v62 = vpack.c.bf16 %v83_v55, %v82_v54  ;;  %v66_v63 = vld [vmem:[#allocation4 + $0x60] sm:$0xff]  ;;  %v67_v1 = vld [vmem:[#allocation4 + $0x68] sm:$0xff]  ;;  %vm258_vm1 = vcmp.ge.s32.totalorder %v257_v36, 64 }
  0x32   :  { %372 = vmatprep.subr.bf16.mxu0 %v371_v25  ;;  %v52_v56 = vmax.f32 %v51_v50, 0.0  ;;  %v84_v2 = vld [vmem:[#allocation4 + $0xf0] sm:$0xff]  ;;  %v85_v3 = vld [vmem:[#allocation4 + $0xf8] sm:$0xff]  ;;  %v401_v6 = vpack.c.bf16 %v93_v59, %v92_v58  ;;  %v94_v7 = vld [vmem:[#allocation4 + $0x140] sm:$0xff]  ;;  %v385_v9 = vpack.c.bf16 %v67_v1, %v66_v63 }
  0x33   :  { %396 = vmatpush3.bf16.msra.mxu1 %v395_v46  ;;  %v95_v8 = vld [vmem:[#allocation4 + $0x148] sm:$0xff]  ;;  %v387_v10 = vpack.c.bf16 %v85_v3, %v84_v2  ;;  %v68_v11 = vld [vmem:[#allocation4 + $0x70] sm:$0xff]  ;;  %v69_v12 = vld [vmem:[#allocation4 + $0x78] sm:$0xff] }
  0x34   :  { %397 = vmatprep.subr.bf16.mxu1 %v476_v0  ;;  %v53_v61 = vmin.f32 %v52_v56, 1.0  ;;  %v404_v13 = vpack.c.bf16 %v95_v8, %v94_v7  ;;  %v96_v14 = vld [vmem:[#allocation4 + $0x150] sm:$0xff]  ;;  %v97_v15 = vld [vmem:[#allocation4 + $0x158] sm:$0xff]  ;;  %v389_v16 = vpack.c.bf16 %v69_v12, %v68_v11  ;;  %v98_v18 = vld [vmem:[#allocation4 + $0x160] sm:$0xff] }
  0x35   :  { %374 = vmatpush3.bf16.msra.mxu0 %v373_v33  ;;  %v407_v17 = vpack.c.bf16 %v97_v15, %v96_v14  ;;  %v99_v19 = vld [vmem:[#allocation4 + $0x168] sm:$0xff]  ;;  %v100_v21 = vld [vmem:[#allocation4 + $0x170] sm:$0xff]  ;;  %v101_v22 = vld [vmem:[#allocation4 + $0x178] sm:$0xff] }
  0x36   :  { %376 = vmatprep.subr.bf16.mxu0 %v375_v39  ;;  %v109_v5 = vcombine.high %v53_v61, %v53_v61  ;;  %v410_v20 = vpack.c.bf16 %v99_v19, %v98_v18  ;;  %v413_v23 = vpack.c.bf16 %v101_v22, %v100_v21  ;;  %v270_v26 = vld [vmem:[#allocation4 + $0x180] ss:$0 sm:$0xff]  ;;  %v271_v31 = vld [vmem:[#allocation4 + $0x181] ss:$0 sm:$0xff] }
  0x37   :  { %399 = vmatpush3.bf16.msra.mxu1 %v398_v57 }
  0x38   :  { %400 = vmatprep.subr.bf16.mxu1 %v476_v0  ;;  %175 = vmatprep.mubr.f32.mxu0 %v109_v5 }
  0x39   :  { %378 = vmatpush3.bf16.msra.mxu0 %v377_v49 }
  0x3a   :  { %380 = vmatprep.subr.bf16.mxu0 %v379_v51 }
  0x3b   :  { %402 = vmatpush3.bf16.msra.mxu1 %v401_v6 }
  0x3c   :  { %403 = vmatprep.subr.bf16.mxu1 %v476_v0 }
  0x3d   :  { %382 = vmatpush3.bf16.msra.mxu0 %v381_v60 }
  0x3e   :  { %384 = vmatprep.subr.bf16.mxu0 %v383_v62 }
  0x3f   :  { %405 = vmatpush3.bf16.msra.mxu1 %v404_v13 }
  0x40   :  { %406 = vmatprep.subr.bf16.mxu1 %v476_v0 }
  0x41   :  { %386 = vmatpush3.bf16.msra.mxu0 %v385_v9 }
  0x42   :  { %388 = vmatprep.subr.bf16.mxu0 %v387_v10 }
  0x43   :  { %408 = vmatpush3.bf16.msra.mxu1 %v407_v17 }
  0x44   :  { %409 = vmatprep.subr.bf16.mxu1 %v476_v0 }
  0x45   :  { %390 = vmatpush3.bf16.msra.mxu0 %v389_v16 }
  0x47   :  { %411 = vmatpush3.bf16.msra.mxu1 %v410_v20 }
  0x48   :  { %176 = vmatmul.mubr.f32.vlgmr.msra.gmra.mrb[0].mxu0 %v53_v61  ;;  %412 = vmatprep.subr.bf16.mxu1 %v476_v0 }
  0x4b   :  { %414 = vmatpush3.bf16.msra.mxu1 %v413_v23 }
 0x11b   :  { %v304_v25 = vpop.f32.mrb[0].mxu0 }
 0x11c   :  { %v305_v27 = vpop.f32.mrb[1].mxu0 }
 0x11d   :  { %v306_v28 = vadd.f32 %v305_v27, %v304_v25 }
 0x11f   :  { %v178_v29 = vadd.f32 %v306_v28, %v270_v26 }
 0x121   :  { %v181_v30 = vmax.f32 %v178_v29, 0.0 }
 0x123   :  { %357 = vmatmul.mubr.f32.vlgmr.msra.gmra.mrb[0].mxu1 %v181_v30 }
 0x1f6   :  { %v252_v32 = vpop.f32.mrb[0].mxu1 }
 0x1f7   :  { %v253_v33 = vadd.f32 %v271_v31, %v252_v32  ;;  %v358_v34 = vpop.f32.mrb[1].mxu1 }
 0x1f9   :  { %v259_v35 = vmul.f32 0.5, %v253_v33 }
 0x1fb   :  { %v260_v0 = vmul.f32 1.442695, %v259_v35 }
 0x1fd   :  { %422 = vpow2.f32 %v260_v0 }
 0x207   :  { %v423_v37 = vpop.eup %422 }
 0x208   :  { %v262_v38 = vsel %vm258_vm1, %v423_v37, %v253_v33 }
 0x209   :  { %263 = vst [vmem:[%s540_s2] sm:$0x3] %v262_v38 }
 0x20a   :  { %268 = vsyncpa [#allocation3], 1 }
 0x20b   :  { %269 = vsyncpa [#allocation5], 1 }

</bundles_post_ra>
